<compile_context>
chip_gen: v7x
topology: tpu7x:2x2x1
jax: 0.10.0
libtpu: 0.0.40
codegen_flags: <defaults>
</compile_context>

<pallas_src>
import functools

import jax
import jax.numpy as jnp
from jax.experimental import pallas as pl
from jax.experimental.pallas import tpu as pltpu


_LANE = 128                 # lane-width alignment for feature dims
_TILE_B_ALIGN = 16          # 16-aligned batch tiles: full bf16 sublane packing
_MIB = 1024 * 1024
_MOSAIC_SLACK = 2 * _MIB    # headroom for Mosaic internal scratch


def _round_up(n, m):
    return ((n + m - 1) // m) * m


def _pad_axis(a, axis, target):
    if a.shape[axis] == target:
        return a
    pads = [(0, 0)] * a.ndim
    pads[axis] = (0, target - a.shape[axis])
    return jnp.pad(a, pads)


def _vmem_budget():
    """Generation-aware VMEM budget/limit (bytes).

    ~96 MiB budget on 128 MiB chips (v5e/v6e), ~40 MiB on 64 MiB/TC (v7x)."""
    try:
        cap = int(pltpu.get_tpu_info().vmem_capacity_bytes)
    except Exception:
        cap = 64 * _MIB                          # conservative fallback
    budget = cap - max(24 * _MIB, cap // 4)
    limit = min(cap - 8 * _MIB, budget + 12 * _MIB)
    return budget, limit


def _vmem_bytes(blk, blk_n, in_dim, h1_p, h2_p, out_itemsize):
    """Working-set model (bytes) for one TensorCore at the given tile sizes."""
    io = blk * in_dim * 4 * 2 + blk * blk_n * out_itemsize * 2      # dbl-buffered x / out
    weights = (in_dim * h1_p + h1_p * h2_p + h2_p * blk_n) * 2 * 2  # bf16, dbl-buffered
    biases = (h1_p + h2_p + blk_n) * 4 * 2
    scratch = blk * h2_p * 2                                        # bf16 h2 scratch
    interm = blk * (h1_p * 6 + h2_p * 4 + blk_n * 4)                # live f32/bf16 temps
    return io + weights + biases + scratch + interm + _MOSAIC_SLACK


def _decoder_kernel(x_ref, w1_ref, b1_ref, w2_ref, b2_ref, w3_ref, b3_ref,
                    o_ref, h2_ref):
    # Layers 1 & 2 run once per batch tile (out-column tile j == 0); the
    # bf16 h2 activations stay resident in VMEM scratch across the j axis.
    @pl.when(pl.program_id(1) == 0)
    def _():
        xb = x_ref[...].astype(jnp.bfloat16)     # in-kernel cast, hidden under MXU
        h1 = jnp.dot(xb, w1_ref[...], preferred_element_type=jnp.float32)
        h1 = jnp.maximum(h1 + b1_ref[...], 0.0)
        h2 = jnp.dot(h1.astype(jnp.bfloat16), w2_ref[...],
                     preferred_element_type=jnp.float32)
        h2_ref[...] = jnp.maximum(h2 + b2_ref[...], 0.0).astype(jnp.bfloat16)
    # Layer 3 for this (batch tile, out-column tile); lane-dense f32 store.
    o = jnp.dot(h2_ref[...], w3_ref[...], preferred_element_type=jnp.float32)
    o_ref[...] = (o + b3_ref[...]).astype(o_ref.dtype)


@functools.partial(jax.jit, static_argnames=("out_dim", "block_b"))
def decoder_forward(x, w1, b1, w2, b2, w3, b3, *, out_dim, block_b=512):
    """Fused decoder forward.

    Expects *prepared* params from `prepare_decoder_params` (lane-padded,
    weights bf16, biases f32).  x is (B, in_dim) and is neither padded nor
    pre-cast here; returns (B, out_dim) in x.dtype."""
    B, in_dim = x.shape
    h1_p, h2_p, out_p = w1.shape[1], w2.shape[1], w3.shape[1]
    out_dtype = x.dtype
    out_itemsize = jnp.dtype(out_dtype).itemsize

    budget, vmem_limit = _vmem_budget()

    # ---- tile sizing: big 16-aligned batch tile, out-column tiling fallback --
    blk = _round_up(min(block_b, B), _TILE_B_ALIGN)
    blk_n = out_p                                      # multiple of 128 by construction
    while _vmem_bytes(blk, blk_n, in_dim, h1_p, h2_p, out_itemsize) > budget:
        if blk > 256:
            blk = _round_up(blk // 2, _TILE_B_ALIGN)
        elif blk_n > _LANE:
            blk_n = max(_LANE, (blk_n // 2) // _LANE * _LANE)
        elif blk > _TILE_B_ALIGN:
            blk = _round_up(blk // 2, _TILE_B_ALIGN)
        else:
            break

    # Guarantee >=2 batch grid steps so both v7x TensorCores get a tile
    # (near-zero cost on single-TC v5e/v6e: one extra ~0.35us grid step).
    if -(-B // blk) < 2 and blk > _TILE_B_ALIGN and B > _TILE_B_ALIGN:
        blk = max(_TILE_B_ALIGN, _round_up(-(-B // 2), _TILE_B_ALIGN))

    n_b = -(-B // blk)
    n_n = -(-out_p // blk_n)

    in_specs = [
        pl.BlockSpec((blk, in_dim), lambda i, j: (i, 0)),    # x streams over batch tiles
        pl.BlockSpec((in_dim, h1_p), lambda i, j: (0, 0)),   # resident w1
        pl.BlockSpec((1, h1_p), lambda i, j: (0, 0)),        # resident b1
        pl.BlockSpec((h1_p, h2_p), lambda i, j: (0, 0)),     # resident w2
        pl.BlockSpec((1, h2_p), lambda i, j: (0, 0)),        # resident b2
        pl.BlockSpec((h2_p, blk_n), lambda i, j: (0, j)),    # w3 tiled over out columns
        pl.BlockSpec((1, blk_n), lambda i, j: (0, j)),       # b3 tiled over out columns
    ]
    out_spec = pl.BlockSpec((blk, blk_n), lambda i, j: (i, j))

    flops = 2 * B * (in_dim * h1_p + h1_p * h2_p + h2_p * out_p)
    bytes_accessed = (
        B * in_dim * 4
        + (in_dim * h1_p + h1_p * h2_p + h2_p * out_p) * 2
        + (h1_p + h2_p + out_p) * 4
        + B * out_p * out_itemsize
    )

    y = pl.pallas_call(
        _decoder_kernel,
        out_shape=jax.ShapeDtypeStruct((B, out_p), out_dtype),
        grid_spec=pltpu.PrefetchScalarGridSpec(
            num_scalar_prefetch=0,
            grid=(n_b, n_n),
            in_specs=in_specs,
            out_specs=out_spec,
            scratch_shapes=[pltpu.VMEM((blk, h2_p), jnp.bfloat16)],
        ),
        compiler_params=pltpu.CompilerParams(
            dimension_semantics=("parallel", "arbitrary"),
            vmem_limit_bytes=vmem_limit,
        ),
        cost_estimate=pl.CostEstimate(flops=flops, transcendentals=0,
                                      bytes_accessed=bytes_accessed),
    )(x, w1, b1, w2, b2, w3, b3)

    return y[:, :out_dim]


def prepare_decoder_params(w1, b1, w2, b2, w3, b3):
    """One-time weight prep: call once, reuse for every forward.

    Pads fan-out dims to lane (128) multiples and w2/w3 fan-in to match
    (exact: padded hidden columns are relu(0 + 0) = 0, padded fan-in rows are
    multiplied by those zeros), casts weights to bf16 and biases to f32.
    Hoisting this out of the hot path removes the per-call read+rewrite HBM
    pass over every weight matrix."""
    h1_dim, h2_dim, out_dim = w1.shape[1], w2.shape[1], w3.shape[1]
    h1_p = _round_up(h1_dim, _LANE)
    h2_p = _round_up(h2_dim, _LANE)
    out_p = _round_up(out_dim, _LANE)
    w1_p = _pad_axis(w1, 1, h1_p).astype(jnp.bfloat16)
    w2_p = _pad_axis(_pad_axis(w2, 0, h1_p), 1, h2_p).astype(jnp.bfloat16)
    w3_p = _pad_axis(_pad_axis(w3, 0, h2_p), 1, out_p).astype(jnp.bfloat16)
    b1_p = _pad_axis(b1.reshape(1, -1), 1, h1_p).astype(jnp.float32)
    b2_p = _pad_axis(b2.reshape(1, -1), 1, h2_p).astype(jnp.float32)
    b3_p = _pad_axis(b3.reshape(1, -1), 1, out_p).astype(jnp.float32)
    return (w1_p, b1_p, w2_p, b2_p, w3_p, b3_p), out_dim


def init_decoder_params(key, in_dim, hidden_dim1, hidden_dim2, out_dim,
                        dtype=jnp.float32):
    """Deterministic init mirroring nn.Linear's U(-1/sqrt(fan_in), 1/sqrt(fan_in)).

    Weights are stored transposed vs PyTorch: (fan_in, fan_out)."""
    keys = jax.random.split(key, 6)

    def linear(kw, kb, fan_in, fan_out):
        bound = 1.0 / jnp.sqrt(fan_in)
        w = jax.random.uniform(kw, (fan_in, fan_out), dtype, -bound, bound)
        b = jax.random.uniform(kb, (1, fan_out), dtype, -bound, bound)
        return w, b

    w1, b1 = linear(keys[0], keys[1], in_dim, hidden_dim1)
    w2, b2 = linear(keys[2], keys[3], hidden_dim1, hidden_dim2)
    w3, b3 = linear(keys[4], keys[5], hidden_dim2, out_dim)
    return w1, b1, w2, b2, w3, b3


def decoder_reference(x, w1, b1, w2, b2, w3, b3):
    """Pure-JAX reference using the same bf16-in / f32-accumulate math.

    NOTE: results differ from an f32 PyTorch Decoder by O(1e-2) relative
    error because the MXU path uses bf16 operands (documented tradeoff)."""
    def dense(h, w, b):
        return jnp.dot(h.astype(jnp.bfloat16), w.astype(jnp.bfloat16),
                       preferred_element_type=jnp.float32) + b
    h1 = jnp.maximum(dense(x, w1, b1), 0.0)
    h2 = jnp.maximum(dense(h1, w2, b2), 0.0)
    return dense(h2, w3, b3).astype(x.dtype)


if __name__ == "__main__":
    # Small Decoder(in_dim=32, hidden_dim1=64, hidden_dim2=96, out_dim=256).
    # B=200 with the default block_b exercises the ">=2 parallel grid steps"
    # logic (tile 112 -> grid (2, 1)) so both v7x TensorCores get a tile.
    B, in_dim, h1_dim, h2_dim, out_dim = 200, 32, 64, 96, 256

    key = jax.random.PRNGKey(0)
    k_x, k_p = jax.random.split(key)
    x = jax.random.normal(k_x, (B, in_dim), jnp.float32)
    raw_params = init_decoder_params(k_p, in_dim, h1_dim, h2_dim, out_dim)

    # One-time weight prep, hoisted out of the per-call hot path.
    prepped, out_dim_real = prepare_decoder_params(*raw_params)
    prepped = tuple(jax.block_until_ready(p) for p in prepped)

    out = decoder_forward(x, *prepped, out_dim=out_dim_real)
    out = jax.block_until_ready(out)

    ref = decoder_reference(x, *raw_params)
    assert out.shape == (B, out_dim)
    assert jnp.allclose(out, ref, atol=2e-3, rtol=2e-3), "mismatch vs reference"

    print("KERNEL_OK")
</pallas_src>

<mosaic_0001>
module attributes {stable_mosaic.version = 11 : i64} {
  func.func @_decoder_kernel(%arg0: i32, %arg1: i32, %arg2: memref<112x32xf32, #tpu.memory_space<vmem>>, %arg3: memref<32x128xbf16, #tpu.memory_space<vmem>>, %arg4: memref<1x128xf32, #tpu.memory_space<vmem>>, %arg5: memref<128x128xbf16, #tpu.memory_space<vmem>>, %arg6: memref<1x128xf32, #tpu.memory_space<vmem>>, %arg7: memref<128x256xbf16, #tpu.memory_space<vmem>>, %arg8: memref<1x256xf32, #tpu.memory_space<vmem>>, %arg9: memref<112x256xf32, #tpu.memory_space<vmem>>, %arg10: memref<112x128xbf16, #tpu.memory_space<vmem>>) attributes {dimension_semantics = [#tpu.dimension_semantics<parallel>, #tpu.dimension_semantics<arbitrary>], iteration_bounds = array<i64: 2, 1>, scalar_prefetch = 0 : i64, scratch_operands = 1 : i64, tpu.core_type = #tpu.core_type<tc>, window_params = [{transform_indices = @transform_0, window_bounds = array<i64: 112, 32>}, {pipeline_mode = #tpu.pipeline_mode<synchronous>, transform_indices = @transform_1, window_bounds = array<i64: 32, 128>}, {pipeline_mode = #tpu.pipeline_mode<synchronous>, transform_indices = @transform_2, window_bounds = array<i64: 1, 128>}, {pipeline_mode = #tpu.pipeline_mode<synchronous>, transform_indices = @transform_3, window_bounds = array<i64: 128, 128>}, {pipeline_mode = #tpu.pipeline_mode<synchronous>, transform_indices = @transform_4, window_bounds = array<i64: 1, 128>}, {transform_indices = @transform_5, window_bounds = array<i64: 128, 256>}, {transform_indices = @transform_6, window_bounds = array<i64: 1, 256>}, {transform_indices = @transform_7, window_bounds = array<i64: 112, 256>}]} {
    %c0_i32 = arith.constant 0 : i32
    %0 = arith.cmpi eq, %arg1, %c0_i32 : i32
    %1 = arith.extui %0 : i1 to i32
    %c0_i32_0 = arith.constant 0 : i32
    %2 = arith.cmpi ne, %1, %c0_i32_0 : i32
    scf.if %2 {
      %c0_8 = arith.constant 0 : index
      %c0_9 = arith.constant 0 : index
      %10 = vector.load %arg2[%c0_8, %c0_9] : memref<112x32xf32, #tpu.memory_space<vmem>>, vector<112x32xf32>
      %11 = arith.truncf %10 : vector<112x32xf32> to vector<112x32xbf16>
      %c0_10 = arith.constant 0 : index
      %c0_11 = arith.constant 0 : index
      %12 = vector.load %arg3[%c0_10, %c0_11] : memref<32x128xbf16, #tpu.memory_space<vmem>>, vector<32x128xbf16>
      %cst_12 = arith.constant dense<0.000000e+00> : vector<112x128xf32>
      %13 = tpu.matmul %11, %12, %cst_12 {dimension_numbers = #tpu.dot_dimension_numbers<[1], [0], [0], [1], [0, 0, 1, 1], [], []>} : vector<112x32xbf16>, vector<32x128xbf16>, vector<112x128xf32> -> vector<112x128xf32>
      %c0_13 = arith.constant 0 : index
      %c0_14 = arith.constant 0 : index
      %14 = vector.load %arg4[%c0_13, %c0_14] : memref<1x128xf32, #tpu.memory_space<vmem>>, vector<1x128xf32>
      %15 = vector.broadcast %14 : vector<1x128xf32> to vector<112x128xf32>
      %16 = arith.addf %13, %15 : vector<112x128xf32>
      %cst_15 = arith.constant 0.000000e+00 : f32
      %17 = vector.broadcast %cst_15 : f32 to vector<112x128xf32>
      %18 = arith.maximumf %16, %17 : vector<112x128xf32>
      %19 = arith.truncf %18 : vector<112x128xf32> to vector<112x128xbf16>
      %c0_16 = arith.constant 0 : index
      %c0_17 = arith.constant 0 : index
      %20 = vector.load %arg5[%c0_16, %c0_17] : memref<128x128xbf16, #tpu.memory_space<vmem>>, vector<128x128xbf16>
      %cst_18 = arith.constant dense<0.000000e+00> : vector<112x128xf32>
      %21 = tpu.matmul %19, %20, %cst_18 {dimension_numbers = #tpu.dot_dimension_numbers<[1], [0], [0], [1], [0, 0, 1, 1], [], []>} : vector<112x128xbf16>, vector<128x128xbf16>, vector<112x128xf32> -> vector<112x128xf32>
      %c0_19 = arith.constant 0 : index
      %c0_20 = arith.constant 0 : index
      %22 = vector.load %arg6[%c0_19, %c0_20] : memref<1x128xf32, #tpu.memory_space<vmem>>, vector<1x128xf32>
      %23 = vector.broadcast %22 : vector<1x128xf32> to vector<112x128xf32>
      %24 = arith.addf %21, %23 : vector<112x128xf32>
      %cst_21 = arith.constant 0.000000e+00 : f32
      %25 = vector.broadcast %cst_21 : f32 to vector<112x128xf32>
      %26 = arith.maximumf %24, %25 : vector<112x128xf32>
      %27 = arith.truncf %26 : vector<112x128xf32> to vector<112x128xbf16>
      %c0_22 = arith.constant 0 : index
      %c0_23 = arith.constant 0 : index
      %28 = vector.load %arg10[%c0_22, %c0_23] : memref<112x128xbf16, #tpu.memory_space<vmem>>, vector<112x128xbf16>
      tpu.vector_store %arg10[%c0_22, %c0_23], %27 {strides = array<i32>} : memref<112x128xbf16, #tpu.memory_space<vmem>>, vector<112x128xbf16>,
    } else {
    }
    %c0 = arith.constant 0 : index
    %c0_1 = arith.constant 0 : index
    %3 = vector.load %arg10[%c0, %c0_1] : memref<112x128xbf16, #tpu.memory_space<vmem>>, vector<112x128xbf16>
    %c0_2 = arith.constant 0 : index
    %c0_3 = arith.constant 0 : index
    %4 = vector.load %arg7[%c0_2, %c0_3] : memref<128x256xbf16, #tpu.memory_space<vmem>>, vector<128x256xbf16>
    %cst = arith.constant dense<0.000000e+00> : vector<112x256xf32>
    %5 = tpu.matmul %3, %4, %cst {dimension_numbers = #tpu.dot_dimension_numbers<[1], [0], [0], [1], [0, 0, 1, 1], [], []>} : vector<112x128xbf16>, vector<128x256xbf16>, vector<112x256xf32> -> vector<112x256xf32>
    %c0_4 = arith.constant 0 : index
    %c0_5 = arith.constant 0 : index
    %6 = vector.load %arg8[%c0_4, %c0_5] : memref<1x256xf32, #tpu.memory_space<vmem>>, vector<1x256xf32>
    %7 = vector.broadcast %6 : vector<1x256xf32> to vector<112x256xf32>
    %8 = arith.addf %5, %7 : vector<112x256xf32>
    %c0_6 = arith.constant 0 : index
    %c0_7 = arith.constant 0 : index
    %9 = vector.load %arg9[%c0_6, %c0_7] : memref<112x256xf32, #tpu.memory_space<vmem>>, vector<112x256xf32>
    tpu.vector_store %arg9[%c0_6, %c0_7], %8 {strides = array<i32>} : memref<112x256xf32, #tpu.memory_space<vmem>>, vector<112x256xf32>,
    return
  }
  func.func @transform_0(%arg0: i32, %arg1: i32) -> (i32, i32) {
    %c0_i32 = arith.constant 0 : i32
    %c0_i32_0 = arith.constant 0 : i32
    return %arg0, %c0_i32 : i32, i32
  }
  func.func @transform_1(%arg0: i32, %arg1: i32) -> (i32, i32) {
    %c0_i32 = arith.constant 0 : i32
    %c0_i32_0 = arith.constant 0 : i32
    %c0_i32_1 = arith.constant 0 : i32
    return %c0_i32, %c0_i32_0 : i32, i32
  }
  func.func @transform_2(%arg0: i32, %arg1: i32) -> (i32, i32) {
    %c0_i32 = arith.constant 0 : i32
    %c0_i32_0 = arith.constant 0 : i32
    %c0_i32_1 = arith.constant 0 : i32
    return %c0_i32, %c0_i32_0 : i32, i32
  }
  func.func @transform_3(%arg0: i32, %arg1: i32) -> (i32, i32) {
    %c0_i32 = arith.constant 0 : i32
    %c0_i32_0 = arith.constant 0 : i32
    %c0_i32_1 = arith.constant 0 : i32
    return %c0_i32, %c0_i32_0 : i32, i32
  }
  func.func @transform_4(%arg0: i32, %arg1: i32) -> (i32, i32) {
    %c0_i32 = arith.constant 0 : i32
    %c0_i32_0 = arith.constant 0 : i32
    %c0_i32_1 = arith.constant 0 : i32
    return %c0_i32, %c0_i32_0 : i32, i32
  }
  func.func @transform_5(%arg0: i32, %arg1: i32) -> (i32, i32) {
    %c0_i32 = arith.constant 0 : i32
    %c0_i32_0 = arith.constant 0 : i32
    return %c0_i32, %arg1 : i32, i32
  }
  func.func @transform_6(%arg0: i32, %arg1: i32) -> (i32, i32) {
    %c0_i32 = arith.constant 0 : i32
    %c0_i32_0 = arith.constant 0 : i32
    return %c0_i32, %arg1 : i32, i32
  }
  func.func @transform_7(%arg0: i32, %arg1: i32) -> (i32, i32) {
    %c0_i32 = arith.constant 0 : i32
    return %arg0, %arg1 : i32, i32
  }
}

</mosaic_0001>

<bundles_post_ra>
// kernel: decoder_forward.1
= control target key start
LH: loop header
LB: loop body
LE: loop exit
PB: predicated region body
PF: predicated region fallthrough
CT: control target
= control target key end

     0   :  { %12 = vsyncpa [#allocation4], 0  ;;  %s1865_s0 = inlined_call_operand.vmem [shape: f32[200,32], index: 0, kind: input, shape index: {}]   ;;  %s1866_s1 = inlined_call_operand.vmem [shape: bf16[32,128], index: 1, kind: input, shape index: {}]   ;;  %s1867_s2 = inlined_call_operand.vmem [shape: f32[1,128], index: 2, kind: input, shape index: {}]   ;;  %s1868_s3 = inlined_call_operand.vmem [shape: bf16[128,128], index: 3, kind: input, shape index: {}]   ;;  %s1869_s4 = inlined_call_operand.vmem [shape: f32[1,128], index: 4, kind: input, shape index: {}]   ;;  %s1870_s5 = inlined_call_operand.vmem [shape: bf16[128,256], index: 5, kind: input, shape index: {}]   ;;  %s1871_s6 = inlined_call_operand.vmem [shape: f32[1,256], index: 6, kind: input, shape index: {}]   ;;  %s1872_s7 = inlined_call_operand.hbm [shape: f32[200,256], index: 7, kind: output, shape index: {}]  }
   0x1   :  { %14 = vsyncpa [#allocation4 + $0x1], 0  ;;  %s1480_s24 = smov 0   ;;  %s1482_s25 = smov 0  }
   0x2   :  { %s1484_s26 = smov 0   ;;  %s1486_s27 = smov 0  }
   0x3   :  { %s1488_s28 = smov 0   ;;  %s1490_s29 = smov 0  }
   0x4 LB: > { %s1100_s30 = sadd.s32 4294967295, %s1432_s29   ;;  %s1101_s8 = sadd.s32 4294967294, %s1432_s29   ;;  %s1432_s29 = sphi %s1490_s29, %s20_s29   ;;  %s1428_s28 = sphi %s1488_s28, %s1879_s28   ;;  %s1424_s27 = sphi %s1486_s27, %s1878_s27   ;;  %s1420_s26 = sphi %s1484_s26, %s1877_s26   ;;  %s1416_s25 = sphi %s1482_s25, %s1876_s25   ;;  %s1412_s24 = sphi %s1480_s24, %s1875_s24  }
   0x5   : > { %s32_s9 = sadd.s32 1, %s1428_s28  ;;  %s203_s10 = sadd.s32 1, %s1420_s26 }
   0x6   : > { %p34_p0 = scmp.ge.s32.totalorder %s32_s9, 2  ;;  %p213_p1 = scmp.ne.s32.totalorder %s1420_s26, %s1416_s25 }
   0x7   : > { %p214_p2 = scmp.eq.s32.totalorder %s1100_s30, 1  ;;  %p219_p3 = scmp.ne.s32.totalorder %s1416_s25, %s1412_s24 }
   0x8   : > { %s1881_s9 = smov (%p34_p0, %s32_s9), 0  ;;  %p220_p5 = scmp.eq.s32.totalorder %s1101_s8, 1 }
   0x9   : > { %p1520_p4 = por %p214_p2, %p213_p1  ;;  %s198_s12 = ssub.s32 %s1428_s28, %s1881_s9 }
   0xa   : > { %p1106_p6 = scmp.ge.s32.totalorder %s1432_s29, 1  ;;  %p201_p7 = scmp.eq.s32.totalorder %s198_s12, 0 }
   0xb   : > { %p1527_p8 = por %p220_p5, %p219_p3  ;;  %p284_p9 = scmp.lt.s32.totalorder %s1432_s29, 3 }
   0xc   : > { %s1533_s14 = scalar_select %p201_p7, %s1420_s26, %s203_s10  }
   0xd   : > { %p285_p10 = pnand %p1106_p6, %p284_p9 }
   0xe   : > { %v1320_v0 = vld [vmem:[%s1866_s1] sm:$0xff] (!%p285_p10)   ;;  %v1434_v1 = vmov (!%p285_p10), 0.0   ;;  %v1321_v2 = vld [vmem:[%s1866_s1 + $0x8] sm:$0xff] (!%p285_p10)   ;;  %vm1435_vm0 = vmmov (!%p285_p10), 0   ;;  %s1546_s19 = smul.u32 (!%p285_p10), 14, %s1424_s27  ;;  %vm410_vm1 = vcmask (!%p285_p10), 261120  }
   0xf   : > { %288 = sbr.rel (%p285_p10) target bundleno = 763 (0x2fb), region = 48  ;;  %1180 = vmatprep.subr.bf16.mxu0 (!%p285_p10), %v1434_v1  ;;  %1256 = vmatprep.subr.bf16.mxu1 (!%p285_p10), %v1434_v1  ;;  %v1322_v8 = vld [vmem:[%s1868_s3] sm:$0xff] (!%p285_p10)   ;;  %v1323_v14 = vld [vmem:[%s1868_s3 + $0x8] sm:$0xff] (!%p285_p10)   ;;  %v1324_v17 = vld [vmem:[%s1868_s3 + $0x10] sm:$0xff] (!%p285_p10)   ;;  %s326_s16 = sand.u32 (!%p285_p10), 1, %s1416_s25  }
  0x10   : > { %1181 = vmatpush3.bf16.msra.mxu0 (!%p285_p10), %v1320_v0  ;;  %1184 = vmatprep.mubr.msk.bf16.mxu0 (!%p285_p10), %vm1435_vm0, %v1434_v1  ;;  %p334_p11 = scmp.lt.s32.totalorder (!%p285_p10), %s1546_s19, 24  ;;  %v1325_v23 = vld [vmem:[%s1868_s3 + $0x18] sm:$0xff] (!%p285_p10)   ;;  %v1326_v25 = vld [vmem:[%s1868_s3 + $0x20] sm:$0xff] (!%p285_p10)   ;;  %v1327_v29 = vld [vmem:[%s1868_s3 + $0x28] sm:$0xff] (!%p285_p10)   ;;  %s1799_s22 = scalar_lea.sflag (!%p285_p10), [#allocation4], %s326_s16 }
  0x11   : > { %1182 = vmatprep.subr.bf16.mxu0 (!%p285_p10), %v1434_v1  ;;  %1258 = vmatpush3.bf16.msra.mxu1 (!%p285_p10), %v1320_v0  ;;  %v1328_v30 = vld [vmem:[%s1868_s3 + $0x30] sm:$0xff] (!%p285_p10)   ;;  %v1329_v31 = vld [vmem:[%s1868_s3 + $0x38] sm:$0xff] (!%p285_p10)   ;;  %v1330_v32 = vld [vmem:[%s1870_s5] ss:$8 sps:$4 sm:$0xff] (!%p285_p10)  }
  0x12   : > { %1257 = vmatprep.subr.bf16.mxu1 (!%p285_p10), %v1434_v1  ;;  %1200 = vmatprep.mubr.msk.bf16.mxu1 (!%p285_p10), %vm1435_vm0, %v1434_v1  ;;  %v1332_v33 = vld [vmem:[%s1870_s5 + $0x4] ss:$8 sps:$4 sm:$0xff] (!%p285_p10)   ;;  %v1335_v34 = vld [vmem:[%s1870_s5 + $0x14] ss:$8 sps:$4 sm:$0xff] (!%p285_p10)   ;;  %v1333_v35 = vld [vmem:[%s1870_s5 + $0x10] ss:$8 sps:$4 sm:$0xff] (!%p285_p10)  }
  0x13   : > { %v1338_v36 = vld [vmem:[%s1870_s5 + $0x24] ss:$8 sps:$4 sm:$0xff] (!%p285_p10)   ;;  %v1336_v37 = vld [vmem:[%s1870_s5 + $0x20] ss:$8 sps:$4 sm:$0xff] (!%p285_p10)   ;;  %v1341_v38 = vld [vmem:[%s1870_s5 + $0x34] ss:$8 sps:$4 sm:$0xff] (!%p285_p10)  }
  0x14   : > { %1183 = vmatpush3.bf16.msra.mxu0 (!%p285_p10), %v1321_v2  ;;  %v1339_v39 = vld [vmem:[%s1870_s5 + $0x30] ss:$8 sps:$4 sm:$0xff] (!%p285_p10)   ;;  %v1344_v40 = vld [vmem:[%s1870_s5 + $0x44] ss:$8 sps:$4 sm:$0xff] (!%p285_p10)   ;;  %v1342_v41 = vld [vmem:[%s1870_s5 + $0x40] ss:$8 sps:$4 sm:$0xff] (!%p285_p10)  }
  0x15   : > { %1259 = vmatpush3.bf16.msra.mxu1 (!%p285_p10), %v1321_v2  ;;  %845 = vmatprep.subr.bf16.mxu0 (!%p285_p10), %v1332_v33  ;;  %v1347_v42 = vld [vmem:[%s1870_s5 + $0x54] ss:$8 sps:$4 sm:$0xff] (!%p285_p10)   ;;  %v1345_v43 = vld [vmem:[%s1870_s5 + $0x50] ss:$8 sps:$4 sm:$0xff] (!%p285_p10)   ;;  %v1663_v44 = vld [vmem:[%s1867_s2] ss:$0 sm:$0xff] (!%p285_p10) }
  0x16   : > { %s335_s20 = scalar_select %p334_p11, %s1546_s19, 24  ;;  %1212 = vmatprep.subr.bf16.mxu1 %v1434_v1 }
  0x17   : > { %s986_s23 = ssub.s32 (%p1520_p4), 25, %s1546_s19 }
  0x18   : > { %s1107_s21 = sshll.u32 %s335_s20, 3  ;;  %s1260_s20 = smul.u32 224, %s326_s16 }
  0x19   : > { %s1558_s30 = scalar_lea.vmem %s1865_s0, %s1107_s21  ;;  %p987_p12 = scmp.lt.s32.totalorder (%p1520_p4), %s986_s23, 14 }
  0x1a   : > { %v366_v3 = vld [vmem:[%s1558_s30] sm:$0xff]  ;;  %v367_v4 = vld [vmem:[%s1558_s30 + $0x8] sm:$0xff]  ;;  %v368_v9 = vld [vmem:[%s1558_s30 + $0x10] sm:$0xff]  ;;  %s1741_s21 = scalar_lea.vmem [#allocation3], %s1260_s20 }
  0x1b   : > { %v380_v5 = vpack.c.bf16 %v367_v4, %v366_v3  ;;  %v374_v6 = vld [vmem:[%s1558_s30 + $0x40] sm:$0xff]  ;;  %v375_v7 = vld [vmem:[%s1558_s30 + $0x48] sm:$0xff]  ;;  %v369_v10 = vld [vmem:[%s1558_s30 + $0x18] sm:$0xff] }
  0x1c   : > { %v384_v11 = vpack.c.bf16 %v375_v7, %v374_v6  ;;  %v376_v12 = vld [vmem:[%s1558_s30 + $0x50] sm:$0xff]  ;;  %v377_v13 = vld [vmem:[%s1558_s30 + $0x58] sm:$0xff]  ;;  %v381_v15 = vpack.c.bf16 %v369_v10, %v368_v9  ;;  %v370_v18 = vld [vmem:[%s1558_s30 + $0x20] sm:$0xff] }
  0x1d   : > { %1185 = vmatmul.mubr.msk.bf16.vlgmr.msra.gmra.mrb[0].mxu0 %vm410_vm1, %v380_v5  ;;  %v385_v16 = vpack.c.bf16 %v377_v13, %v376_v12  ;;  %v371_v19 = vld [vmem:[%s1558_s30 + $0x28] sm:$0xff]  ;;  %v378_v21 = vld [vmem:[%s1558_s30 + $0x60] sm:$0xff]  ;;  %v372_v26 = vld [vmem:[%s1558_s30 + $0x30] sm:$0xff] }
  0x1e   : > { %1188 = vmatprep.mubr.msk.bf16.mxu0 %vm1435_vm0, %v1434_v1  ;;  %1201 = vmatmul.mubr.msk.bf16.vlgmr.msra.gmra.mrb[0].mxu1 %vm410_vm1, %v384_v11  ;;  %v382_v20 = vpack.c.bf16 %v371_v19, %v370_v18  ;;  %v379_v22 = vld [vmem:[%s1558_s30 + $0x68] sm:$0xff]  ;;  %v373_v27 = vld [vmem:[%s1558_s30 + $0x38] sm:$0xff] }
  0x1f   : > { %1204 = vmatprep.mubr.msk.bf16.mxu1 %vm1435_vm0, %v1434_v1  ;;  %1213 = vmatpush3.bf16.msra.mxu1 %v1322_v8  ;;  %v386_v24 = vpack.c.bf16 %v379_v22, %v378_v21  ;;  %v383_v28 = vpack.c.bf16 %v373_v27, %v372_v26 }
  0x20   : > { %1214 = vmatprep.subr.bf16.mxu1 %v1434_v1  ;;  %846 = vmatpush1.bf16.msra.mxu0 %v1330_v32 }
  0x21   : > { %847 = vmatprep.subr.bf16.mxu0 %v1335_v34 }
  0x23   : > { %1215 = vmatpush3.bf16.msra.mxu1 %v1323_v14 }
  0x24   : > { %1216 = vmatprep.subr.bf16.mxu1 %v1434_v1  ;;  %848 = vmatpush1.bf16.msra.mxu0 %v1333_v35 }
  0x25   : > { %1189 = vmatmul.mubr.msk.bf16.gmra.mrb[4].mxu0 %vm410_vm1, %v381_v15  ;;  %849 = vmatprep.subr.bf16.mxu0 %v1338_v36 }
  0x26   : > { %1192 = vmatprep.mubr.msk.bf16.mxu0 %vm1435_vm0, %v1434_v1  ;;  %1205 = vmatmul.mubr.msk.bf16.gmra.mrb[4].mxu1 %vm410_vm1, %v385_v16 }
  0x27   : > { %1208 = vmatprep.mubr.msk.bf16.mxu1 %vm1435_vm0, %v1434_v1  ;;  %1217 = vmatpush3.bf16.msra.mxu1 %v1324_v17 }
  0x28   : > { %1218 = vmatprep.subr.bf16.mxu1 %v1434_v1  ;;  %850 = vmatpush1.bf16.msra.mxu0 %v1336_v37 }
  0x29   : > { %851 = vmatprep.subr.bf16.mxu0 %v1341_v38 }
  0x2b   : > { %1219 = vmatpush3.bf16.msra.mxu1 %v1325_v23 }
  0x2c   : > { %1220 = vmatprep.subr.bf16.mxu1 %v1434_v1  ;;  %852 = vmatpush1.bf16.msra.mxu0 %v1339_v39 }
  0x2d   : > { %1193 = vmatmul.mubr.msk.bf16.gmra.mrb[8].mxu0 %vm410_vm1, %v382_v20  ;;  %853 = vmatprep.subr.bf16.mxu0 %v1344_v40 }
  0x2e   : > { %1196 = vmatprep.mubr.msk.bf16.mxu0 %vm1435_vm0, %v1434_v1  ;;  %1209 = vmatmul.mubr.msk.bf16.gmra.mrb[8].mxu1 %vm410_vm1, %v386_v24 }
  0x2f   : > { %1221 = vmatpush3.bf16.msra.mxu1 %v1326_v25  ;;  %1228 = vmatprep.mubr.msk.bf16.mxu1 %vm1435_vm0, %v1434_v1 }
  0x30   : > { %1222 = vmatprep.subr.bf16.mxu1 %v1434_v1  ;;  %854 = vmatpush1.bf16.msra.mxu0 %v1342_v41 }
  0x31   : > { %855 = vmatprep.subr.bf16.mxu0 %v1347_v42 }
  0x33   : > { %1223 = vmatpush3.bf16.msra.mxu1 %v1327_v29 }
  0x34   : > { %1224 = vmatprep.subr.bf16.mxu1 %v1434_v1  ;;  %856 = vmatpush1.bf16.msra.mxu0 %v1345_v43 }
  0x35   : > { %1197 = vmatmul.mubr.msk.bf16.gmra.mrb[12].mxu0 %vm410_vm1, %v383_v28 }
  0x37   : > { %1225 = vmatpush3.bf16.msra.mxu1 %v1328_v30 }
  0x38   : > { %1226 = vmatprep.subr.bf16.mxu1 %v1434_v1 }
  0x3b   : > { %1227 = vmatpush3.bf16.msra.mxu1 %v1329_v31 }
  0xf0   : > { %v466_v45 = vpop.f32.mrb[0].mxu0 }
  0xf1   : > { %v467_v46 = vadd.f32 %v1663_v44, %v466_v45  ;;  %v1186_v47 = vpop.f32.mrb[1].mxu0  ;;  %v498_v51 = vpop.f32.mrb[0].mxu1 }
  0xf2   : > { %v469_v48 = vpop.f32.mrb[2].mxu0  ;;  %v499_v52 = vadd.f32 %v1663_v44, %v498_v51  ;;  %v1202_v53 = vpop.f32.mrb[1].mxu1  ;;  %v1353_v47 = vld [vmem:[%s1870_s5 + $0x74] ss:$8 sps:$4 sm:$0xff]  }
  0xf3   : > { %v470_v49 = vadd.f32 %v1663_v44, %v469_v48  ;;  %v1187_v50 = vpop.f32.mrb[3].mxu0  ;;  %v521_v54 = vmax.f32 %v467_v46, 0.0  ;;  %v501_v56 = vpop.f32.mrb[2].mxu1  ;;  %v1348_v46 = vld [vmem:[%s1870_s5 + $0x60] ss:$8 sps:$4 sm:$0xff]  }
  0xf4   : > { %v529_v57 = vmax.f32 %v499_v52, 0.0  ;;  %v502_v58 = vadd.f32 %v1663_v44, %v501_v56  ;;  %v1203_v59 = vpop.f32.mrb[3].mxu1  ;;  %v1351_v48 = vld [vmem:[%s1870_s5 + $0x70] ss:$8 sps:$4 sm:$0xff]  }
  0xf5   : > { %v522_v55 = vmax.f32 %v470_v49, 0.0  ;;  %v1707_v49 = vld [vmem:[%s1869_s4] ss:$0 sm:$0xff] }
  0xf6   : > { %v530_v62 = vmax.f32 %v502_v58, 0.0 }
  0xf7   : > { %v535_v60 = vpack.c.bf16 %v522_v55, %v521_v54 }
  0xf8   : > { %v474_v61 = vpop.f32.mrb[4].mxu0  ;;  %v539_v3 = vpack.c.bf16 %v530_v62, %v529_v57 }
  0xf9   : > { %v475_v63 = vadd.f32 %v1663_v44, %v474_v61  ;;  %v1190_v0 = vpop.f32.mrb[5].mxu0  ;;  %1229 = vmatmul.mubr.bf16.vlgmr.msra.gmra.mrb[12].mxu1 %v535_v60  ;;  %v506_v6 = vpop.f32.mrb[4].mxu1 }
  0xfa   : > { %v477_v2 = vpop.f32.mrb[6].mxu0  ;;  %1232 = vmatprep.mubr.msk.bf16.mxu1 %vm1435_vm0, %v1434_v1  ;;  %v507_v7 = vadd.f32 %v1663_v44, %v506_v6  ;;  %v1206_v8 = vpop.f32.mrb[5].mxu1 }
  0xfb   : > { %v478_v4 = vadd.f32 %v1663_v44, %v477_v2  ;;  %v1191_v5 = vpop.f32.mrb[7].mxu0  ;;  %v523_v9 = vmax.f32 %v475_v63, 0.0  ;;  %v509_v11 = vpop.f32.mrb[6].mxu1 }
  0xfc   : > { %v531_v12 = vmax.f32 %v507_v7, 0.0  ;;  %v510_v13 = vadd.f32 %v1663_v44, %v509_v11  ;;  %v1207_v14 = vpop.f32.mrb[7].mxu1 }
  0xfd   : > { %v524_v10 = vmax.f32 %v478_v4, 0.0 }
  0xfe   : > { %v532_v17 = vmax.f32 %v510_v13, 0.0 }
  0xff   : > { %v536_v15 = vpack.c.bf16 %v524_v10, %v523_v9 }
 0x100   : > { %v482_v16 = vpop.f32.mrb[8].mxu0  ;;  %v540_v21 = vpack.c.bf16 %v532_v17, %v531_v12 }
 0x101   : > { %v483_v18 = vadd.f32 %v1663_v44, %v482_v16  ;;  %v1194_v19 = vpop.f32.mrb[9].mxu0  ;;  %1233 = vmatmul.mubr.bf16.gmra.mrb[16].mxu1 %v536_v15  ;;  %v514_v24 = vpop.f32.mrb[8].mxu1 }
 0x102   : > { %v485_v20 = vpop.f32.mrb[10].mxu0  ;;  %1236 = vmatprep.mubr.msk.bf16.mxu1 %vm1435_vm0, %v1434_v1  ;;  %v515_v25 = vadd.f32 %v1663_v44, %v514_v24  ;;  %v1210_v26 = vpop.f32.mrb[9].mxu1 }
 0x103   : > { %v486_v22 = vadd.f32 %v1663_v44, %v485_v20  ;;  %v1195_v23 = vpop.f32.mrb[11].mxu0  ;;  %v525_v27 = vmax.f32 %v483_v18, 0.0  ;;  %v517_v29 = vpop.f32.mrb[10].mxu1 }
 0x104   : > { %v533_v30 = vmax.f32 %v515_v25, 0.0  ;;  %v518_v31 = vadd.f32 %v1663_v44, %v517_v29  ;;  %v1211_v32 = vpop.f32.mrb[11].mxu1 }
 0x105   : > { %v526_v28 = vmax.f32 %v486_v22, 0.0 }
 0x106   : > { %v534_v35 = vmax.f32 %v518_v31, 0.0 }
 0x107   : > { %v537_v33 = vpack.c.bf16 %v526_v28, %v525_v27 }
 0x108   : > { %v490_v34 = vpop.f32.mrb[12].mxu0  ;;  %v541_v39 = vpack.c.bf16 %v534_v35, %v533_v30 }
 0x109   : > { %v491_v36 = vadd.f32 %v1663_v44, %v490_v34  ;;  %v1198_v37 = vpop.f32.mrb[13].mxu0  ;;  %1237 = vmatmul.mubr.bf16.gmra.mrb[20].mxu1 %v537_v33 }
 0x10a   : > { %v493_v38 = vpop.f32.mrb[14].mxu0  ;;  %1240 = vmatprep.mubr.msk.bf16.mxu1 %vm1435_vm0, %v1434_v1 }
 0x10b   : > { %v494_v40 = vadd.f32 %v1663_v44, %v493_v38  ;;  %v1199_v41 = vpop.f32.mrb[15].mxu0  ;;  %v527_v42 = vmax.f32 %v491_v36, 0.0  ;;  %v1350_v44 = vld [vmem:[%s1870_s5 + $0x64] ss:$8 sps:$4 sm:$0xff]  }
 0x10c   : > { %857 = vmatprep.subr.bf16.mxu0 %v1350_v44 }
 0x10d   : > { %v528_v43 = vmax.f32 %v494_v40, 0.0  ;;  %858 = vmatpush1.bf16.msra.mxu0 %v1348_v46 }
 0x10e   : > { %859 = vmatprep.subr.bf16.mxu0 %v1353_v47 }
 0x10f   : > { %v538_v45 = vpack.c.bf16 %v528_v43, %v527_v42 }
 0x111   : > { %1241 = vmatmul.mubr.bf16.gmra.mrb[24].mxu1 %v538_v45  ;;  %860 = vmatpush1.bf16.msra.mxu0 %v1351_v48 }
 0x112   : > { %1244 = vmatprep.mubr.msk.bf16.mxu1 %vm1435_vm0, %v1434_v1 }
 0x119   : > { %1245 = vmatmul.mubr.bf16.gmra.mrb[28].mxu1 %v539_v3 }
 0x11a   : > { %1248 = vmatprep.mubr.msk.bf16.mxu1 %vm1435_vm0, %v1434_v1 }
 0x121   : > { %1249 = vmatmul.mubr.bf16.gmra.mrb[32].mxu1 %v540_v21 }
 0x122   : > { %1252 = vmatprep.mubr.msk.bf16.mxu1 %vm1435_vm0, %v1434_v1  ;;  %v1436_v1 = vmov 0  }
 0x123   : > { %877 = vmatprep.mubr.bf16.mxu0 %v1436_v1 }
 0x129   : > { %1253 = vmatmul.mubr.bf16.gmra.mrb[36].mxu1 %v541_v39 }
 0x1cc   : > { %v647_v50 = vpop.f32.mrb[12].mxu1 }
 0x1cd   : > { %v648_v51 = vadd.f32 %v1707_v49, %v647_v50  ;;  %v1230_v52 = vpop.f32.mrb[13].mxu1 }
 0x1ce   : > { %v650_v53 = vpop.f32.mrb[14].mxu1 }
 0x1cf   : > { %v651_v54 = vadd.f32 %v1707_v49, %v650_v53  ;;  %v1231_v55 = vpop.f32.mrb[15].mxu1  ;;  %v702_v56 = vmax.f32 %v648_v51, 0.0  ;;  %v755_v51 = vlaneseq }
 0x1d1   : > { %v703_v57 = vmax.f32 %v651_v54, 0.0  ;;  %v756_v52 = vshrl.u32 %v755_v51, 7  ;;  %v753_v54 = vld [vmem:[%s1871_s6] sm:$0x3] }
 0x1d3   : > { %v716_v58 = vpack.c.bf16 %v703_v57, %v702_v56  ;;  %v757_v53 = vsub.s32 0, %v756_v52  ;;  %v761_v55 = vsub.s32 1, %v756_v52 }
 0x1d4   : > { %v655_v59 = vpop.f32.mrb[16].mxu1 }
 0x1d5   : > { %v656_v60 = vadd.f32 %v1707_v49, %v655_v59  ;;  %v1234_v61 = vpop.f32.mrb[17].mxu1  ;;  %878 = vmatmul.mubr.bf16.vlgmr.msra.gmra.mrb[16].mxu0 %v716_v58  ;;  %v1735_v56 = vrot.slane %v753_v54, %v757_v53 }
 0x1d6   : > { %v658_v62 = vpop.f32.mrb[18].mxu1  ;;  %887 = vmatprep.mubr.bf16.mxu0 %v1436_v1 }
 0x1d7   : > { %v659_v63 = vadd.f32 %v1707_v49, %v658_v62  ;;  %v1235_v0 = vpop.f32.mrb[19].mxu1  ;;  %v704_v2 = vmax.f32 %v656_v60, 0.0 }
 0x1d9   : > { %v705_v3 = vmax.f32 %v659_v63, 0.0 }
 0x1db   : > { %v717_v4 = vpack.c.bf16 %v705_v3, %v704_v2 }
 0x1dc   : > { %v663_v5 = vpop.f32.mrb[20].mxu1 }
 0x1dd   : > { %v664_v6 = vadd.f32 %v1707_v49, %v663_v5  ;;  %v1238_v7 = vpop.f32.mrb[21].mxu1  ;;  %888 = vmatmul.mubr.bf16.gmra.mrb[20].mxu0 %v717_v4 }
 0x1de   : > { %v666_v8 = vpop.f32.mrb[22].mxu1  ;;  %897 = vmatprep.mubr.bf16.mxu0 %v1436_v1 }
 0x1df   : > { %v667_v9 = vadd.f32 %v1707_v49, %v666_v8  ;;  %v1239_v10 = vpop.f32.mrb[23].mxu1  ;;  %v706_v11 = vmax.f32 %v664_v6, 0.0 }
 0x1e1   : > { %v707_v12 = vmax.f32 %v667_v9, 0.0 }
 0x1e3   : > { %v718_v13 = vpack.c.bf16 %v707_v12, %v706_v11 }
 0x1e4   : > { %v671_v14 = vpop.f32.mrb[24].mxu1 }
 0x1e5   : > { %v672_v15 = vadd.f32 %v1707_v49, %v671_v14  ;;  %v1242_v16 = vpop.f32.mrb[25].mxu1  ;;  %898 = vmatmul.mubr.bf16.gmra.mrb[24].mxu0 %v718_v13 }
 0x1e6   : > { %v674_v17 = vpop.f32.mrb[26].mxu1  ;;  %907 = vmatprep.mubr.bf16.mxu0 %v1436_v1 }
 0x1e7   : > { %v675_v18 = vadd.f32 %v1707_v49, %v674_v17  ;;  %v1243_v19 = vpop.f32.mrb[27].mxu1  ;;  %v708_v20 = vmax.f32 %v672_v15, 0.0 }
 0x1e9   : > { %v709_v21 = vmax.f32 %v675_v18, 0.0 }
 0x1eb   : > { %v719_v22 = vpack.c.bf16 %v709_v21, %v708_v20 }
 0x1ec   : > { %v679_v23 = vpop.f32.mrb[28].mxu1 }
 0x1ed   : > { %v680_v24 = vadd.f32 %v1707_v49, %v679_v23  ;;  %v1246_v25 = vpop.f32.mrb[29].mxu1  ;;  %908 = vmatmul.mubr.bf16.gmra.mrb[28].mxu0 %v719_v22 }
 0x1ee   : > { %v682_v26 = vpop.f32.mrb[30].mxu1  ;;  %917 = vmatprep.mubr.bf16.mxu0 %v1436_v1 }
 0x1ef   : > { %v683_v27 = vadd.f32 %v1707_v49, %v682_v26  ;;  %v1247_v28 = vpop.f32.mrb[31].mxu1  ;;  %v710_v29 = vmax.f32 %v680_v24, 0.0 }
 0x1f1   : > { %v711_v30 = vmax.f32 %v683_v27, 0.0 }
 0x1f3   : > { %v720_v31 = vpack.c.bf16 %v711_v30, %v710_v29 }
 0x1f4   : > { %v687_v32 = vpop.f32.mrb[32].mxu1 }
 0x1f5   : > { %v688_v33 = vadd.f32 %v1707_v49, %v687_v32  ;;  %v1250_v34 = vpop.f32.mrb[33].mxu1  ;;  %918 = vmatmul.mubr.bf16.gmra.mrb[32].mxu0 %v720_v31 }
 0x1f6   : > { %v690_v35 = vpop.f32.mrb[34].mxu1  ;;  %927 = vmatprep.mubr.bf16.mxu0 %v1436_v1 }
 0x1f7   : > { %v691_v36 = vadd.f32 %v1707_v49, %v690_v35  ;;  %v1251_v37 = vpop.f32.mrb[35].mxu1  ;;  %v712_v38 = vmax.f32 %v688_v33, 0.0 }
 0x1f9   : > { %v713_v39 = vmax.f32 %v691_v36, 0.0 }
 0x1fb   : > { %v721_v40 = vpack.c.bf16 %v713_v39, %v712_v38 }
 0x1fc   : > { %v695_v41 = vpop.f32.mrb[36].mxu1 }
 0x1fd   : > { %v696_v42 = vadd.f32 %v1707_v49, %v695_v41  ;;  %v1254_v43 = vpop.f32.mrb[37].mxu1  ;;  %928 = vmatmul.mubr.bf16.gmra.mrb[36].mxu0 %v721_v40 }
 0x1fe   : > { %v698_v45 = vpop.f32.mrb[38].mxu1  ;;  %937 = vmatprep.mubr.bf16.mxu0 %v1436_v1  ;;  %v1737_v1 = vrot.slane %v753_v54, %v761_v55 }
 0x1ff   : > { %v699_v44 = vadd.f32 %v1707_v49, %v698_v45  ;;  %v1255_v46 = vpop.f32.mrb[39].mxu1  ;;  %v714_v47 = vmax.f32 %v696_v42, 0.0 }
 0x201   : > { %v715_v48 = vmax.f32 %v699_v44, 0.0 }
 0x203   : > { %v722_v50 = vpack.c.bf16 %v715_v48, %v714_v47 }
 0x205   : > { %938 = vmatmul.mubr.bf16.gmra.mrb[40].mxu0 %v722_v50 }
 0x2a8   : > { %v879_v49 = vpop.f32.mrb[16].mxu0 }
 0x2a9   : > { %v880_v57 = vadd.f32 %v879_v49, %v1735_v56  ;;  %v881_v58 = vpop.f32.mrb[17].mxu0 }
 0x2aa   : > { %v882_v59 = vadd.f32 %v881_v58, %v1737_v1  ;;  %v883_v60 = vpop.f32.mrb[18].mxu0 }
 0x2ab   : > { %948 = vst [vmem:[%s1741_s21] sm:$0xff] %v880_v57  ;;  %v884_v61 = vadd.f32 %v883_v60, %v1735_v56  ;;  %v885_v62 = vpop.f32.mrb[19].mxu0 }
 0x2ac   : > { %949 = vst [vmem:[%s1741_s21 + $0x8] sm:$0xff] %v882_v59  ;;  %v886_v63 = vadd.f32 %v885_v62, %v1737_v1 }
 0x2ad   : > { %950 = vst [vmem:[%s1741_s21 + $0x10] sm:$0xff] %v884_v61 }
 0x2ae   : > { %951 = vst [vmem:[%s1741_s21 + $0x18] sm:$0xff] %v886_v63 }
 0x2b0   : > { %v889_v0 = vpop.f32.mrb[20].mxu0 }
 0x2b1   : > { %v890_v2 = vadd.f32 %v889_v0, %v1735_v56  ;;  %v891_v3 = vpop.f32.mrb[21].mxu0 }
 0x2b2   : > { %v892_v4 = vadd.f32 %v891_v3, %v1737_v1  ;;  %v893_v5 = vpop.f32.mrb[22].mxu0 }
 0x2b3   : > { %952 = vst [vmem:[%s1741_s21 + $0x20] sm:$0xff] %v890_v2  ;;  %v894_v6 = vadd.f32 %v893_v5, %v1735_v56  ;;  %v895_v7 = vpop.f32.mrb[23].mxu0 }
 0x2b4   : > { %953 = vst [vmem:[%s1741_s21 + $0x28] sm:$0xff] %v892_v4  ;;  %v896_v8 = vadd.f32 %v895_v7, %v1737_v1 }
 0x2b5   : > { %954 = vst [vmem:[%s1741_s21 + $0x30] sm:$0xff] %v894_v6 }
 0x2b6   : > { %955 = vst [vmem:[%s1741_s21 + $0x38] sm:$0xff] %v896_v8 }
 0x2b8   : > { %v899_v9 = vpop.f32.mrb[24].mxu0 }
 0x2b9   : > { %v900_v10 = vadd.f32 %v899_v9, %v1735_v56  ;;  %v901_v11 = vpop.f32.mrb[25].mxu0 }
 0x2ba   : > { %v902_v12 = vadd.f32 %v901_v11, %v1737_v1  ;;  %v903_v13 = vpop.f32.mrb[26].mxu0 }
 0x2bb   : > { %956 = vst [vmem:[%s1741_s21 + $0x40] sm:$0xff] %v900_v10  ;;  %v904_v14 = vadd.f32 %v903_v13, %v1735_v56  ;;  %v905_v15 = vpop.f32.mrb[27].mxu0 }
 0x2bc   : > { %957 = vst [vmem:[%s1741_s21 + $0x48] sm:$0xff] %v902_v12  ;;  %v906_v16 = vadd.f32 %v905_v15, %v1737_v1 }
 0x2bd   : > { %958 = vst [vmem:[%s1741_s21 + $0x50] sm:$0xff] %v904_v14 }
 0x2be   : > { %959 = vst [vmem:[%s1741_s21 + $0x58] sm:$0xff] %v906_v16 }
 0x2c0   : > { %v909_v17 = vpop.f32.mrb[28].mxu0 }
 0x2c1   : > { %v910_v18 = vadd.f32 %v909_v17, %v1735_v56  ;;  %v911_v19 = vpop.f32.mrb[29].mxu0 }
 0x2c2   : > { %v912_v20 = vadd.f32 %v911_v19, %v1737_v1  ;;  %v913_v21 = vpop.f32.mrb[30].mxu0 }
 0x2c3   : > { %960 = vst [vmem:[%s1741_s21 + $0x60] sm:$0xff] %v910_v18  ;;  %v914_v22 = vadd.f32 %v913_v21, %v1735_v56  ;;  %v915_v23 = vpop.f32.mrb[31].mxu0 }
 0x2c4   : > { %961 = vst [vmem:[%s1741_s21 + $0x68] sm:$0xff] %v912_v20  ;;  %v916_v24 = vadd.f32 %v915_v23, %v1737_v1 }
 0x2c5   : > { %962 = vst [vmem:[%s1741_s21 + $0x70] sm:$0xff] %v914_v22 }
 0x2c6   : > { %963 = vst [vmem:[%s1741_s21 + $0x78] sm:$0xff] %v916_v24 }
 0x2c8   : > { %v919_v25 = vpop.f32.mrb[32].mxu0 }
 0x2c9   : > { %v920_v26 = vadd.f32 %v919_v25, %v1735_v56  ;;  %v921_v27 = vpop.f32.mrb[33].mxu0 }
 0x2ca   : > { %v922_v28 = vadd.f32 %v921_v27, %v1737_v1  ;;  %v923_v29 = vpop.f32.mrb[34].mxu0 }
 0x2cb   : > { %964 = vst [vmem:[%s1741_s21 + $0x80] sm:$0xff] %v920_v26  ;;  %v924_v30 = vadd.f32 %v923_v29, %v1735_v56  ;;  %v925_v31 = vpop.f32.mrb[35].mxu0 }
 0x2cc   : > { %965 = vst [vmem:[%s1741_s21 + $0x88] sm:$0xff] %v922_v28  ;;  %v926_v32 = vadd.f32 %v925_v31, %v1737_v1 }
 0x2cd   : > { %966 = vst [vmem:[%s1741_s21 + $0x90] sm:$0xff] %v924_v30 }
 0x2ce   : > { %967 = vst [vmem:[%s1741_s21 + $0x98] sm:$0xff] %v926_v32 }
 0x2d0   : > { %v929_v33 = vpop.f32.mrb[36].mxu0 }
 0x2d1   : > { %v930_v34 = vadd.f32 %v929_v33, %v1735_v56  ;;  %v931_v35 = vpop.f32.mrb[37].mxu0 }
 0x2d2   : > { %v932_v36 = vadd.f32 %v931_v35, %v1737_v1  ;;  %v933_v37 = vpop.f32.mrb[38].mxu0 }
 0x2d3   : > { %968 = vst [vmem:[%s1741_s21 + $0xa0] sm:$0xff] %v930_v34  ;;  %v934_v38 = vadd.f32 %v933_v37, %v1735_v56  ;;  %v935_v39 = vpop.f32.mrb[39].mxu0 }
 0x2d4   : > { %969 = vst [vmem:[%s1741_s21 + $0xa8] sm:$0xff] %v932_v36  ;;  %v936_v40 = vadd.f32 %v935_v39, %v1737_v1 }
 0x2d5   : > { %970 = vst [vmem:[%s1741_s21 + $0xb0] sm:$0xff] %v934_v38 }
 0x2d6   : > { %971 = vst [vmem:[%s1741_s21 + $0xb8] sm:$0xff] %v936_v40 }
 0x2d8   : > { %v939_v41 = vpop.f32.mrb[40].mxu0  ;;  %983 = sbr.rel (!%p1520_p4) target bundleno = 763 (0x2fb), region = 56 }
 0x2d9   : > { %v940_v42 = vadd.f32 %v939_v41, %v1735_v56  ;;  %v941_v43 = vpop.f32.mrb[41].mxu0 }
 0x2da   : > { %v942_v45 = vadd.f32 %v941_v43, %v1737_v1  ;;  %v943_v44 = vpop.f32.mrb[42].mxu0 }
 0x2db   : > { %972 = vst [vmem:[%s1741_s21 + $0xc0] sm:$0xff] %v940_v42  ;;  %v944_v46 = vadd.f32 %v943_v44, %v1735_v56  ;;  %v945_v47 = vpop.f32.mrb[43].mxu0 }
 0x2dc   : > { %973 = vst [vmem:[%s1741_s21 + $0xc8] sm:$0xff] %v942_v45  ;;  %v946_v48 = vadd.f32 %v945_v47, %v1737_v1 }
 0x2dd   : > { %974 = vst [vmem:[%s1741_s21 + $0xd0] sm:$0xff] %v944_v46 }
 0x2de   : > { %975 = vst [vmem:[%s1741_s21 + $0xd8] sm:$0xff] %v946_v48 }
 0x2df   : > { %s1883_s23 = smov (!%p987_p12, %s986_s23), 14 }
 0x2e0   : > { %s1804_s8 = sshll.u32 %s1883_s23, 8 }
 0x2e1   : > { %s992_s30 = ssub.s32 3584, %s1804_s8 }
 0x2e2   : > { %993 = vsyncadd %s1799_s22, %s992_s30  ;;  %p1145_p13 = scmp.ne.s32.totalorder %s1804_s8, 0  ;;  %s1155_s10 = smul.u32 3584, %s1424_s27 }
 0x2e3   : > { %s1000_s12 = sshll.u32 %s1741_s21, 4  ;;  %s1437_s17 = smov [#allocation3]   ;;  %s1816_s12 = int_to_ptr.vmem [resolvable:$true] %s1000_s12 }
 0x2e4   : > { %s1814_s16 = scalar_lea.hbm %s1872_s7, %s1155_s10  ;;  %s1354_s19 = scalar_lea.vmem %s1816_s12, %s1804_s8 }
 0x2e5   : > { %p1355_p0 = scmp.ne.s32.totalorder %s1816_s12, %s1354_s19  ;;  %s1358_s18 = sshll.u32 %s1437_s17, 4  ;;  %s1359_s18 = int_to_ptr.vmem [resolvable:$false] %s1358_s18 }
 0x2e6   : > { %s1360_s27 = scalar_lea.vmem %s1359_s18, 7168  ;;  %p1361_p3 = scmp.lt.s32.totalorder %s1816_s12, %s1359_s18 }
 0x2e7   : > { %p1356_p1 = pnand %p1355_p0, %p1145_p13  ;;  %p1362_p4 = scmp.lt.s32.totalorder %s1360_s27, %s1354_s19 }
 0x2e9   : > { %p1357_p2 = pneg %p1356_p1  ;;  %p1363_p5 = por %p1362_p4, %p1361_p3 }
 0x2eb   : > { %p1364_p6 = pnand %p1363_p5, %p1357_p2 }
 0x2ed   : > { %1367 = shalt.err (!%p1364_p6)
}
 0x2ee   : > { %s1368_s20 = scalar_lea.hbm %s1814_s16, %s1804_s8  ;;  %s1372_s30 = scalar_lea.hbm %s1872_s7, 6400 }
 0x2ef   : > { %p1369_p7 = scmp.ne.s32.totalorder %s1814_s16, %s1368_s20  ;;  %p1373_p11 = scmp.lt.u32.totalorder %s1814_s16, %s1872_s7 }
 0x2f0   : > { %p1374_p12 = scmp.lt.u32.totalorder %s1372_s30, %s1368_s20  ;;  %p1376_p1 = scmp.lt.u32.totalorder %s1368_s20, %s1814_s16 }
 0x2f1   : > { %p1370_p9 = pnand %p1369_p7, %p1145_p13 }
 0x2f2   : > { %p1375_p0 = por %p1374_p12, %p1373_p11 }
 0x2f3   : > { %p1371_p10 = pneg %p1370_p9 }
 0x2f4   : > { %p1377_p2 = por %p1376_p1, %p1375_p0 }
 0x2f6   : > { %p1378_p3 = pnand %p1377_p2, %p1371_p10 }
 0x2f8   : > { %1381 = shalt.err (!%p1378_p3)
}
 0x2f9   : > { %s1438_s15 = smov 256   ;;  %s1439_s19 = smov 16  }
 0x2fa   : > { %1006 = dma.vmem_to_hbm [thread:$0]  (%p1145_p13), %s1816_s12, %s1804_s8, %s1814_s16, %s1799_s22, %s1438_s15, %s1438_s15, %s1439_s19  }
 0x2fb PF: > { %p1266_p4 = scmp.ge.s32.totalorder %s1432_s29, 2  ;;  %s1015_s17 = sand.u32 1, %s1412_s24  }
 0x2fc   : > { %s1016_s18 = scalar_lea.sflag [#allocation4], %s1015_s17 }
 0x2fd   : > { %p1263_p5 = pnand %p1266_p4, %p1527_p8 }
 0x2ff   : > { %1407 = dma.done.wait (!%p1263_p5), %s1016_s18, 3584  }
 0x300   : > { %1409 = vsyncadd (!%p1263_p5), %s1016_s18, 4294963712  ;;  %s20_s29 = sadd.s32 1, %s1432_s29   ;;  %s1875_s24 = smov %s1416_s25 }
 0x301   : > { %p17_p6 = scmp.ge.s32.totalorder %s20_s29, 4   ;;  %s1876_s25 = smov %s1420_s26 }
 0x302   : > { %s1877_s26 = smov %s1533_s14  ;;  %s1878_s27 = smov %s1428_s28 }
 0x303   : > { %s1879_s28 = smov %s1881_s9  ;;  %19 = sbr.rel (!%p17_p6) target bundleno = 4 (0x4), region = 93 }
 0x30a   :  { %1021 = vsyncpa [#allocation4], 1 }
 0x30b   :  { %1023 = vsyncpa [#allocation4 + $0x1], 1 }

</bundles_post_ra>
